<compile_context>
chip_gen: v7x
topology: tpu7x:2x2x1
jax: 0.10.0
libtpu: 0.0.40
codegen_flags: <defaults>
</compile_context>

<pallas_src>
import functools

import jax
import jax.numpy as jnp
from jax.experimental import pallas as pl
from jax.experimental.pallas import tpu as pltpu


def _rssh_kernel(x_ref, w1_ref, b1_ref, w2_ref, b2_ref, w3_ref, b3_ref, out_ref,
                 *, compute_dtype, merge_stage23):
    # x_ref: (Cin, TS) tile — channels on sublanes, spatial (H*W) on lanes.
    x = x_ref[...]
    if x.dtype != compute_dtype:
        x = x.astype(compute_dtype)            # in-VMEM cast: no extra HBM pass

    c1 = w1_ref.shape[0]
    c2 = w2_ref.shape[0]
    c3 = w3_ref.shape[0]
    out_dtype = out_ref.dtype

    # stage 1: 1x1 conv == (Cout, Cin) @ (Cin, TS); f32 MXU accumulation,
    # folded-BN bias add + ReLU in f32.
    x1 = jnp.maximum(
        jnp.dot(w1_ref[...], x, preferred_element_type=jnp.float32) + b1_ref[...], 0.0)
    x1_c = x1.astype(compute_dtype)            # single cast, reused for store + matmul
    out_ref[0:c1, :] = x1_c if compute_dtype == out_dtype else x1.astype(out_dtype)

    # stage 2
    x2 = jnp.maximum(
        jnp.dot(w2_ref[...], x1_c, preferred_element_type=jnp.float32) + b2_ref[...], 0.0)
    x2_c = x2.astype(compute_dtype)
    x2_o = x2_c if compute_dtype == out_dtype else x2.astype(out_dtype)

    # stage 3
    x3 = jnp.maximum(
        jnp.dot(w3_ref[...], x2_c, preferred_element_type=jnp.float32) + b3_ref[...], 0.0)
    x3_o = x3.astype(out_dtype)

    if merge_stage23:
        # c1 + c2 is not sublane-tile aligned for the output dtype: one contiguous
        # (c2 + c3, TS) store instead of two misaligned (masked) sublane stores.
        out_ref[c1:c1 + c2 + c3, :] = jnp.concatenate([x2_o, x3_o], axis=0)
    else:
        out_ref[c1:c1 + c2, :] = x2_o
        out_ref[c1 + c2:c1 + c2 + c3, :] = x3_o


def _vmem_limit_bytes():
    """Scoped-VMEM request derived from the chip (64 MiB/core on v7x, 128 MiB v5e/v6e)."""
    try:
        cap = int(pltpu.get_tpu_info().vmem_capacity_bytes)
    except Exception:
        cap = None
    if not cap or cap <= 0:
        cap = 64 * 1024 * 1024  # conservative fallback (v7x per-TensorCore VMEM)
    return min(max(cap // 2, 16 * 1024 * 1024), 96 * 1024 * 1024)


def _pick_spatial_tile(hw_padded, max_cols):
    """Largest multiple-of-128 divisor of hw_padded that is <= max_cols (>= 128)."""
    best = 128
    cand = 128
    limit = min(hw_padded, max(128, int(max_cols)))
    while cand <= limit:
        if hw_padded % cand == 0:
            best = cand
        cand += 128
    return best


def rssh_forward(x_nchw, params, *, compute_dtype=jnp.bfloat16, out_dtype=None):
    """x_nchw: (N, C, H, W). Returns (N, C, H, W) since C/2 + C/4 + C/4 = C."""
    n, c, h, w = x_nchw.shape
    hw = h * w
    if out_dtype is None:
        out_dtype = compute_dtype

    w1, b1, w2, b2, w3, b3 = params      # w: (Cout, Cin) f32, b: (Cout, 1) f32
    c1, c2, c3 = w1.shape[0], w2.shape[0], w3.shape[0]
    c_out = c1 + c2 + c3

    # No NCHW<->NHWC transpose and NO wrapper-side dtype cast of x (that would be an
    # extra full HBM read+write pass); the kernel casts in-VMEM before the first matmul.
    x3d = x_nchw.reshape(n, c, hw)

    # Pad H*W up to a multiple of 128 so every store is a full-width lane-dense vst.
    hw_pad = int(pl.cdiv(hw, 128)) * 128
    if hw_pad != hw:
        x3d = jnp.pad(x3d, ((0, 0), (0, 0), (0, hw_pad - hw)))

    # Weights are tiny: cast once on the host side.
    w1c, w2c, w3c = (wi.astype(compute_dtype) for wi in (w1, w2, w3))
    b1c, b2c, b3c = (bi.astype(jnp.float32) for bi in (b1, b2, b3))

    # --- spatial tile selection -------------------------------------------------
    vmem_limit = _vmem_limit_bytes()
    in_b = jnp.dtype(x3d.dtype).itemsize
    cp_b = jnp.dtype(compute_dtype).itemsize
    out_b = jnp.dtype(out_dtype).itemsize
    # Bytes per lane-column: double-buffered input/output DMA tiles plus the in-kernel
    # intermediates (compute-dtype x copy, f32 x1/x2/x3, per-stage casts).
    per_col = (2 * c * in_b + 2 * c_out * out_b      # pipelined DMA buffers
               + c * cp_b                            # in-VMEM x cast
               + c_out * 4                           # f32 x1/x2/x3
               + (c1 + c2) * cp_b + c_out * out_b)   # per-stage store/matmul casts
    budget_cols = int(vmem_limit * 0.75) // max(per_col, 1)   # 25% Mosaic headroom
    # HBM bandwidth saturates by ~1-2K lanes; also keep >= ~8 grid steps when H*W is
    # large enough so v7x's second TensorCore gets work and pipelining can overlap.
    cap = min(budget_cols, 2048, max(128, (hw_pad // 8) // 128 * 128))
    ts = _pick_spatial_tile(hw_pad, cap)
    assert hw_pad % ts == 0

    # Merge the stage-2/3 stores when the concat offset is not sublane-tile aligned
    # for the output dtype (8 sublanes for f32, 16 for bf16).
    sublane_align = max(8, 32 // out_b)
    merge_stage23 = ((c1 + c2) % sublane_align) != 0
    # TODO(synk): for C not a multiple of 4*sublane_align the stage-1 offset c1 itself
    # is misaligned; padding Cout would be needed for fully dense sublane stores.

    kernel = functools.partial(_rssh_kernel,
                               compute_dtype=compute_dtype,
                               merge_stage23=merge_stage23)

    const = lambda i, j: (0, 0)
    out3d = pl.pallas_call(
        kernel,
        out_shape=jax.ShapeDtypeStruct((n, c_out, hw_pad), out_dtype),
        grid_spec=pltpu.PrefetchScalarGridSpec(
            num_scalar_prefetch=0,
            grid=(n, hw_pad // ts),
            in_specs=[
                pl.BlockSpec((None, c, ts), lambda i, j: (i, 0, j)),  # x tile
                pl.BlockSpec((c1, c), const),                         # w1 (full)
                pl.BlockSpec((c1, 1), const),                         # b1
                pl.BlockSpec((c2, c1), const),                        # w2
                pl.BlockSpec((c2, 1), const),                         # b2
                pl.BlockSpec((c3, c2), const),                        # w3
                pl.BlockSpec((c3, 1), const),                         # b3
            ],
            out_specs=pl.BlockSpec((None, c_out, ts), lambda i, j: (i, 0, j)),
        ),
        compiler_params=pltpu.CompilerParams(
            dimension_semantics=("parallel", "parallel"),
            vmem_limit_bytes=int(vmem_limit),
        ),
    )(x3d, w1c, b1c, w2c, b2c, w3c, b3c)

    if hw_pad != hw:
        out3d = out3d[:, :, :hw]
    return out3d.reshape(n, c_out, h, w)


def _fold_bn(w_oc_ic, gamma, beta, mean, var, eps=1e-5):
    """Fold inference-mode BatchNorm into the (Cout, Cin) weight + (Cout, 1) bias."""
    scale = gamma / jnp.sqrt(var + eps)                  # (Cout,)
    w_folded = w_oc_ic * scale[:, None]                  # (Cout, Cin)
    b_folded = (beta - mean * scale)[:, None]            # (Cout, 1)
    return w_folded.astype(jnp.float32), b_folded.astype(jnp.float32)


def make_params(key, in_channels):
    """Deterministic synthetic weights for the three ConvModules (conv + BN folded)."""
    c = in_channels
    dims = [(c, c // 2), (c // 2, c // 4), (c // 4, c // 4)]
    params = []
    for cin, cout in dims:
        k_w, k_g, k_b, k_m, k_v, key = jax.random.split(key, 6)
        # torch conv weight is (Cout, Cin, 1, 1); we keep its (Cout, Cin) matmul form
        wm = jax.random.normal(k_w, (cout, cin), jnp.float32) * (1.0 / jnp.sqrt(cin))
        gamma = 1.0 + 0.1 * jax.random.normal(k_g, (cout,), jnp.float32)
        beta = 0.1 * jax.random.normal(k_b, (cout,), jnp.float32)
        mean = 0.1 * jax.random.normal(k_m, (cout,), jnp.float32)
        var = jnp.abs(jax.random.normal(k_v, (cout,), jnp.float32)) + 0.5
        wf, bf = _fold_bn(wm, gamma, beta, mean, var)
        params.extend([wf, bf])
    return tuple(params)


def rssh_reference(x_nchw, params):
    """Pure-JAX f32 reference of the forward pass."""
    n, c, h, w = x_nchw.shape
    x = x_nchw.reshape(n, c, h * w).astype(jnp.float32)
    w1, b1, w2, b2, w3, b3 = params
    x1 = jnp.maximum(jnp.einsum('oi,nis->nos', w1, x) + b1[None], 0.0)
    x2 = jnp.maximum(jnp.einsum('oi,nis->nos', w2, x1) + b2[None], 0.0)
    x3 = jnp.maximum(jnp.einsum('oi,nis->nos', w3, x2) + b3[None], 0.0)
    out = jnp.concatenate([x1, x2, x3], axis=1)
    return out.reshape(n, -1, h, w)


if __name__ == "__main__":
    key = jax.random.PRNGKey(0)
    k_x, k_p = jax.random.split(key)

    N, C, H, W = 2, 16, 16, 16          # in_channels = 16 -> splits 8, 4, 4
    x = jax.random.normal(k_x, (N, C, H, W), jnp.float32)
    params = make_params(k_p, C)

    ref = rssh_reference(x, params)

    # f32 compute + f32 output path: tight check of the kernel structure.
    out_f32 = jax.block_until_ready(
        rssh_forward(x, params, compute_dtype=jnp.float32, out_dtype=jnp.float32))
    assert out_f32.shape == (N, C, H, W), out_f32.shape
    assert jnp.allclose(out_f32, ref, atol=1e-4, rtol=1e-4), "f32 kernel mismatch"

    # default path: bf16 MXU feed + bf16 output (minimum HBM traffic): loose tolerance.
    out_bf16 = jax.block_until_ready(rssh_forward(x, params))
    assert out_bf16.shape == (N, C, H, W), out_bf16.shape
    assert out_bf16.dtype == jnp.bfloat16, out_bf16.dtype
    assert jnp.allclose(out_bf16.astype(jnp.float32), ref, atol=1e-1, rtol=1e-1), \
        "bf16 kernel mismatch"

    # H*W not a multiple of 128: exercises the lane-padding path.
    Hp, Wp = 10, 10
    xp = jax.random.normal(k_x, (N, C, Hp, Wp), jnp.float32)
    refp = rssh_reference(xp, params)
    outp = jax.block_until_ready(
        rssh_forward(xp, params, compute_dtype=jnp.float32, out_dtype=jnp.float32))
    assert outp.shape == (N, C, Hp, Wp), outp.shape
    assert jnp.allclose(outp, refp, atol=1e-4, rtol=1e-4), "padded-HW kernel mismatch"

    print("KERNEL_OK")
</pallas_src>

<mosaic_0001>
module attributes {stable_mosaic.version = 11 : i64} {
  func.func @_rssh_kernel(%arg0: i32, %arg1: i32, %arg2: memref<1x16x128xf32, #tpu.memory_space<vmem>>, %arg3: memref<8x16xf32, #tpu.memory_space<vmem>>, %arg4: memref<8x1xf32, #tpu.memory_space<vmem>>, %arg5: memref<4x8xf32, #tpu.memory_space<vmem>>, %arg6: memref<4x1xf32, #tpu.memory_space<vmem>>, %arg7: memref<4x4xf32, #tpu.memory_space<vmem>>, %arg8: memref<4x1xf32, #tpu.memory_space<vmem>>, %arg9: memref<1x16x128xf32, #tpu.memory_space<vmem>>) attributes {dimension_semantics = [#tpu.dimension_semantics<parallel>, #tpu.dimension_semantics<parallel>], iteration_bounds = array<i64: 2, 2>, scalar_prefetch = 0 : i64, scratch_operands = 0 : i64, tpu.core_type = #tpu.core_type<tc>, window_params = [{transform_indices = @transform_0, window_bounds = array<i64: 1, 16, 128>}, {pipeline_mode = #tpu.pipeline_mode<synchronous>, transform_indices = @transform_1, window_bounds = array<i64: 8, 16>}, {pipeline_mode = #tpu.pipeline_mode<synchronous>, transform_indices = @transform_2, window_bounds = array<i64: 8, 1>}, {pipeline_mode = #tpu.pipeline_mode<synchronous>, transform_indices = @transform_3, window_bounds = array<i64: 4, 8>}, {pipeline_mode = #tpu.pipeline_mode<synchronous>, transform_indices = @transform_4, window_bounds = array<i64: 4, 1>}, {pipeline_mode = #tpu.pipeline_mode<synchronous>, transform_indices = @transform_5, window_bounds = array<i64: 4, 4>}, {pipeline_mode = #tpu.pipeline_mode<synchronous>, transform_indices = @transform_6, window_bounds = array<i64: 4, 1>}, {transform_indices = @transform_7, window_bounds = array<i64: 1, 16, 128>}]} {
    %c0 = arith.constant 0 : index
    %c0_0 = arith.constant 0 : index
    %c0_1 = arith.constant 0 : index
    %0 = vector.load %arg2[%c0, %c0_0, %c0_1] : memref<1x16x128xf32, #tpu.memory_space<vmem>>, vector<1x16x128xf32>
    %1 = vector.shape_cast %0 : vector<1x16x128xf32> to vector<16x128xf32>
    %c0_2 = arith.constant 0 : index
    %c0_3 = arith.constant 0 : index
    %2 = vector.load %arg3[%c0_2, %c0_3] : memref<8x16xf32, #tpu.memory_space<vmem>>, vector<8x16xf32>
    %cst = arith.constant dense<0.000000e+00> : vector<8x128xf32>
    %3 = tpu.matmul %2, %1, %cst {dimension_numbers = #tpu.dot_dimension_numbers<[1], [0], [0], [1], [0, 0, 1, 1], [], []>} : vector<8x16xf32>, vector<16x128xf32>, vector<8x128xf32> -> vector<8x128xf32>
    %c0_4 = arith.constant 0 : index
    %c0_5 = arith.constant 0 : index
    %4 = vector.load %arg4[%c0_4, %c0_5] : memref<8x1xf32, #tpu.memory_space<vmem>>, vector<8x1xf32>
    %5 = vector.broadcast %4 : vector<8x1xf32> to vector<8x128xf32>
    %6 = arith.addf %3, %5 : vector<8x128xf32>
    %cst_6 = arith.constant 0.000000e+00 : f32
    %7 = vector.broadcast %cst_6 : f32 to vector<8x128xf32>
    %8 = arith.maximumf %6, %7 : vector<8x128xf32>
    %c0_7 = arith.constant 0 : index
    %c0_8 = arith.constant 0 : index
    %c0_9 = arith.constant 0 : index
    %9 = vector.load %arg9[%c0_7, %c0_8, %c0_9] : memref<1x16x128xf32, #tpu.memory_space<vmem>>, vector<1x8x128xf32>
    %10 = vector.shape_cast %9 : vector<1x8x128xf32> to vector<8x128xf32>
    %11 = vector.shape_cast %8 : vector<8x128xf32> to vector<1x8x128xf32>
    tpu.vector_store %arg9[%c0_7, %c0_8, %c0_9], %11 {strides = array<i32>} : memref<1x16x128xf32, #tpu.memory_space<vmem>>, vector<1x8x128xf32>,
    %c0_10 = arith.constant 0 : index
    %c0_11 = arith.constant 0 : index
    %12 = vector.load %arg5[%c0_10, %c0_11] : memref<4x8xf32, #tpu.memory_space<vmem>>, vector<4x8xf32>
    %cst_12 = arith.constant dense<0.000000e+00> : vector<4x128xf32>
    %13 = tpu.matmul %12, %8, %cst_12 {dimension_numbers = #tpu.dot_dimension_numbers<[1], [0], [0], [1], [0, 0, 1, 1], [], []>} : vector<4x8xf32>, vector<8x128xf32>, vector<4x128xf32> -> vector<4x128xf32>
    %c0_13 = arith.constant 0 : index
    %c0_14 = arith.constant 0 : index
    %14 = vector.load %arg6[%c0_13, %c0_14] : memref<4x1xf32, #tpu.memory_space<vmem>>, vector<4x1xf32>
    %15 = vector.broadcast %14 : vector<4x1xf32> to vector<4x128xf32>
    %16 = arith.addf %13, %15 : vector<4x128xf32>
    %cst_15 = arith.constant 0.000000e+00 : f32
    %17 = vector.broadcast %cst_15 : f32 to vector<4x128xf32>
    %18 = arith.maximumf %16, %17 : vector<4x128xf32>
    %c0_16 = arith.constant 0 : index
    %c0_17 = arith.constant 0 : index
    %19 = vector.load %arg7[%c0_16, %c0_17] : memref<4x4xf32, #tpu.memory_space<vmem>>, vector<4x4xf32>
    %cst_18 = arith.constant dense<0.000000e+00> : vector<4x128xf32>
    %20 = tpu.matmul %19, %18, %cst_18 {dimension_numbers = #tpu.dot_dimension_numbers<[1], [0], [0], [1], [0, 0, 1, 1], [], []>} : vector<4x4xf32>, vector<4x128xf32>, vector<4x128xf32> -> vector<4x128xf32>
    %c0_19 = arith.constant 0 : index
    %c0_20 = arith.constant 0 : index
    %21 = vector.load %arg8[%c0_19, %c0_20] : memref<4x1xf32, #tpu.memory_space<vmem>>, vector<4x1xf32>
    %22 = vector.broadcast %21 : vector<4x1xf32> to vector<4x128xf32>
    %23 = arith.addf %20, %22 : vector<4x128xf32>
    %cst_21 = arith.constant 0.000000e+00 : f32
    %24 = vector.broadcast %cst_21 : f32 to vector<4x128xf32>
    %25 = arith.maximumf %23, %24 : vector<4x128xf32>
    %26 = tpu.concatenate %18, %25 in 0 : vector<4x128xf32>, vector<4x128xf32> -> vector<8x128xf32>
    %c0_22 = arith.constant 0 : index
    %c8 = arith.constant 8 : index
    %c0_23 = arith.constant 0 : index
    %27 = vector.load %arg9[%c0_22, %c8, %c0_23] : memref<1x16x128xf32, #tpu.memory_space<vmem>>, vector<1x8x128xf32>
    %28 = vector.shape_cast %27 : vector<1x8x128xf32> to vector<8x128xf32>
    %29 = vector.shape_cast %26 : vector<8x128xf32> to vector<1x8x128xf32>
    tpu.vector_store %arg9[%c0_22, %c8, %c0_23], %29 {strides = array<i32>} : memref<1x16x128xf32, #tpu.memory_space<vmem>>, vector<1x8x128xf32>,
    return
  }
  func.func @transform_0(%arg0: i32, %arg1: i32) -> (i32, i32, i32) {
    %c0_i32 = arith.constant 0 : i32
    %c0_i32_0 = arith.constant 0 : i32
    return %arg0, %c0_i32, %arg1 : i32, i32, i32
  }
  func.func @transform_1(%arg0: i32, %arg1: i32) -> (i32, i32) {
    %c0_i32 = arith.constant 0 : i32
    %c0_i32_0 = arith.constant 0 : i32
    %c0_i32_1 = arith.constant 0 : i32
    return %c0_i32, %c0_i32_0 : i32, i32
  }
  func.func @transform_2(%arg0: i32, %arg1: i32) -> (i32, i32) {
    %c0_i32 = arith.constant 0 : i32
    %c0_i32_0 = arith.constant 0 : i32
    %c0_i32_1 = arith.constant 0 : i32
    return %c0_i32, %c0_i32_0 : i32, i32
  }
  func.func @transform_3(%arg0: i32, %arg1: i32) -> (i32, i32) {
    %c0_i32 = arith.constant 0 : i32
    %c0_i32_0 = arith.constant 0 : i32
    %c0_i32_1 = arith.constant 0 : i32
    return %c0_i32, %c0_i32_0 : i32, i32
  }
  func.func @transform_4(%arg0: i32, %arg1: i32) -> (i32, i32) {
    %c0_i32 = arith.constant 0 : i32
    %c0_i32_0 = arith.constant 0 : i32
    %c0_i32_1 = arith.constant 0 : i32
    return %c0_i32, %c0_i32_0 : i32, i32
  }
  func.func @transform_5(%arg0: i32, %arg1: i32) -> (i32, i32) {
    %c0_i32 = arith.constant 0 : i32
    %c0_i32_0 = arith.constant 0 : i32
    %c0_i32_1 = arith.constant 0 : i32
    return %c0_i32, %c0_i32_0 : i32, i32
  }
  func.func @transform_6(%arg0: i32, %arg1: i32) -> (i32, i32) {
    %c0_i32 = arith.constant 0 : i32
    %c0_i32_0 = arith.constant 0 : i32
    %c0_i32_1 = arith.constant 0 : i32
    return %c0_i32, %c0_i32_0 : i32, i32
  }
  func.func @transform_7(%arg0: i32, %arg1: i32) -> (i32, i32, i32) {
    %c0_i32 = arith.constant 0 : i32
    %c0_i32_0 = arith.constant 0 : i32
    return %arg0, %c0_i32, %arg1 : i32, i32, i32
  }
}

</mosaic_0001>

<bundles_post_ra>
// kernel: tpu_custom_call.1
= control target key start
LH: loop header
LB: loop body
LE: loop exit
PB: predicated region body
PF: predicated region fallthrough
CT: control target
= control target key end

     0   :  { %s1220_s0 = inlined_call_operand.hbm [shape: f32[2,16,256], index: 0, kind: input, shape index: {}]   ;;  %s1221_s1 = inlined_call_operand.vmem [shape: f32[8,16], index: 1, kind: input, shape index: {}]   ;;  %s1222_s2 = inlined_call_operand.vmem [shape: f32[8,1], index: 2, kind: input, shape index: {}]   ;;  %s1223_s3 = inlined_call_operand.vmem [shape: f32[4,8], index: 3, kind: input, shape index: {}]   ;;  %s1224_s4 = inlined_call_operand.vmem [shape: f32[4,1], index: 4, kind: input, shape index: {}]   ;;  %s1225_s5 = inlined_call_operand.vmem [shape: f32[4,4], index: 5, kind: input, shape index: {}]   ;;  %s1226_s6 = inlined_call_operand.vmem [shape: f32[4,1], index: 6, kind: input, shape index: {}]   ;;  %s1227_s7 = inlined_call_operand.hbm [shape: f32[2,16,256], index: 7, kind: output, shape index: {}]  }
   0x1   :  { %1233 = sst [smem:[#allocation11_spill]] %s1225_s5 }
   0x2   :  { %1234 = sst [smem:[#allocation12_spill]] %s1227_s7 }
   0x3   :  { %12 = vsyncpa [#allocation3], 0 }
   0x4   :  { %14 = vsyncpa [#allocation3 + $0x1], 0 }
   0x5   :  { %15 = vsyncpa [#allocation4], 0 }
   0x6   :  { %17 = vsyncpa [#allocation4 + $0x1], 0  ;;  %s993_s24 = smov 0   ;;  %s995_s25 = smov 0  }
   0x7   :  { %s997_s26 = smov 0   ;;  %s999_s27 = smov 0  }
   0x8   :  { %s1001_s28 = smov 0   ;;  %s1003_s29 = smov 0  }
   0x9   :  { %s1005_s30 = smov 0   ;;  %s1007_s8 = smov 0  }
   0xa LB: > { %1235 = sst [smem:[#allocation8_spill]] %s911_s24  ;;  %s675_s9 = sadd.s32 4294967295, %s939_s8   ;;  %s939_s8 = sphi %s1007_s8, %s23_s8   ;;  %s935_s30 = sphi %s1005_s30, %s1256_s30   ;;  %s931_s29 = sphi %s1003_s29, %s1255_s29   ;;  %s927_s28 = sphi %s1001_s28, %s1254_s28   ;;  %s923_s27 = sphi %s999_s27, %s1253_s27   ;;  %s919_s26 = sphi %s997_s26, %s1252_s26   ;;  %s915_s25 = sphi %s995_s25, %s1251_s25   ;;  %s911_s24 = sphi %s993_s24, %s1250_s24  }
   0xb   : > { %s676_s10 = sadd.s32 4294967294, %s939_s8   ;;  %s32_s11 = sadd.s32 1, %s931_s29 }
   0xc   : > { %s35_s12 = sadd.s32 1, %s935_s30  ;;  %p33_p0 = scmp.ge.s32.totalorder %s32_s11, 2 }
   0xd   : > { %s44_s13 = sadd.s32 1, %s919_s26  ;;  %p51_p1 = scmp.ne.s32.totalorder %s919_s26, %s915_s25 }
   0xe   : > { %p52_p2 = scmp.eq.s32.totalorder %s939_s8, 0  ;;  %s1258_s11 = smov (%p33_p0, %s32_s11), 0 }
   0xf   : > { %1236 = sst [smem:[#allocation9_spill]] %s1258_s11  ;;  %s1260_s12 = smov (!%p33_p0, %s35_s12), %s935_s30 }
  0x10   : > { %s40_s14 = ssub.s32 %s931_s29, %s1258_s11  ;;  %p1046_p3 = por %p52_p2, %p51_p1 }
  0x11   : > { %p37_p4 = scmp.ge.s32.totalorder %s1260_s12, 2  ;;  %p57_p5 = scmp.ne.s32.totalorder %s915_s25, %s911_s24 }
  0x12   : > { %p58_p6 = scmp.eq.s32.totalorder %s675_s9, 0  ;;  %p209_p7 = scmp.eq.s32.totalorder %s675_s9, 3 }
  0x13   : > { %s1262_s12 = smov (%p37_p4, %s1260_s12), 0  ;;  %p215_p10 = scmp.eq.s32.totalorder %s676_s10, 3 }
  0x14   : > { %1238 = sst [smem:[#allocation10_spill]] %s1262_s12  ;;  %p1054_p8 = por %p58_p6, %p57_p5 }
  0x15   : > { %p1058_p9 = por %p209_p7, %p51_p1  ;;  %s39_s18 = ssub.s32 %s935_s30, %s1262_s12 }
  0x16   : > { %s41_s19 = sor.u32 %s40_s14, %s39_s18  ;;  %p1064_p12 = por %p215_p10, %p57_p5 }
  0x17   : > { %s1240_s17 = scalar_select %p1058_p9, 1, 0 }
  0x18   : > { %p42_p11 = scmp.eq.s32.totalorder %s41_s19, 0  ;;  %p733_p13 = scmp.lt.s32.totalorder %s939_s8, 4 }
  0x19   : > { %s1241_s20 = scalar_select %p1064_p12, 1, 0 }
  0x1a   : > { %s253_s21 = sand.u32 1, %s919_s26   ;;  %s680_s9 = sshll.u32 %s935_s30, 2 }
  0x1b   : > { %s1071_s22 = scalar_select %p42_p11, %s919_s26, %s44_s13  }
  0x1c   : > { %s679_s23 = sshll.u32 %s253_s21, 4  ;;  %s262_s11 = sadd.s32 %s931_s29, %s680_s9 }
  0x1d   : > { %s257_s24 = scalar_lea.vmem [#allocation2], %s679_s23  ;;  %s681_s5 = sshll.u32 %s262_s11, 7 }
  0x1e   : > { %s265_s7 = sshll.u32 %s257_s24, 4  ;;  %s1080_s14 = scalar_lea.hbm %s1220_s0, %s681_s5  ;;  %s1075_s7 = int_to_ptr.vmem [resolvable:$true] %s265_s7 }
  0x1f   : > { %p1084_p0 = pnand %p733_p13, %p1046_p3  ;;  %s1088_s24 = scalar_lea.sflag [#allocation3], %s253_s21 }
  0x20   : > { %s811_s11 = scalar_lea.hbm %s1080_s14, 256  ;;  %s816_s15 = scalar_lea.hbm %s1220_s0, 1024 }
  0x21   : > { %p812_p1 = scmp.ne.s32.totalorder %s1080_s14, %s811_s11  ;;  %p813_p2 = pneg %p1084_p0 }
  0x22   : > { %p817_p3 = scmp.lt.u32.totalorder %s1080_s14, %s1220_s0  ;;  %p818_p6 = scmp.lt.u32.totalorder %s816_s15, %s811_s11 }
  0x23   : > { %p814_p4 = pnand %p813_p2, %p812_p1  ;;  %p820_p10 = scmp.lt.u32.totalorder %s811_s11, %s1080_s14 }
  0x24   : > { %p819_p7 = por %p818_p6, %p817_p3 }
  0x25   : > { %p815_p5 = pneg %p814_p4 }
  0x26   : > { %p821_p11 = por %p820_p10, %p819_p7 }
  0x28   : > { %p822_p13 = pnand %p821_p11, %p815_p5 }
  0x2a   : > { %825 = shalt.err (!%p822_p13)
}
  0x2b   : > { %s826_s21 = scalar_lea.vmem %s1075_s7, 256  ;;  %s941_s23 = smov [#allocation2]  }
  0x2c   : > { %p827_p1 = scmp.ne.s32.totalorder %s1075_s7, %s826_s21  ;;  %s831_s9 = sshll.u32 %s941_s23, 4  ;;  %s832_s9 = int_to_ptr.vmem [resolvable:$false] %s831_s9 }
  0x2d   : > { %s833_s10 = scalar_lea.vmem %s832_s9, 512  ;;  %p834_p9 = scmp.lt.s32.totalorder %s1075_s7, %s832_s9 }
  0x2e   : > { %p829_p4 = pnand %p827_p1, %p813_p2  ;;  %p835_p3 = scmp.lt.s32.totalorder %s833_s10, %s826_s21 }
  0x30   : > { %p830_p12 = pneg %p829_p4  ;;  %p836_p6 = por %p835_p3, %p834_p9 }
  0x32   : > { %p837_p7 = pnand %p836_p6, %p830_p12 }
  0x34   : > { %840 = shalt.err (!%p837_p7)
}
  0x35   : > { %s942_s11 = smov 256   ;;  %s943_s5 = smov 128  }
  0x36   : > { %s944_s12 = smov 8   ;;  %p682_p2 = scmp.ge.s32.totalorder %s939_s8, 1 }
  0x37   : > { %728 = dma.hbm_to_vmem [thread:$0]  (!%p1084_p0), %s1080_s14, 256, %s1075_s7, %s1088_s24, %s942_s11, %s943_s5, %s944_s12  }
  0x38   : > { %p273_p5 = scmp.lt.s32.totalorder %s939_s8, 5 }
  0x3a   : > { %p274_p10 = pnand %p682_p2, %p273_p5 }
  0x3b   : > { %s1119_s15 = sand.u32 (!%p274_p10), 1, %s915_s25  }
  0x3c   : > { %277 = sbr.rel (%p274_p10) target bundleno = 744 (0x2e8), region = 48  ;;  %s683_s18 = sshll.u32 (!%p274_p10), %s1119_s15, 4 }
  0x3d   : > { %s280_s19 = scalar_lea.sflag (!%p274_p10), [#allocation3], %s1119_s15  ;;  %s283_s21 = scalar_lea.vmem (!%p274_p10), [#allocation2], %s683_s18 }
  0x43   : > { %902 = dma.done.wait (%p1054_p8), %s280_s19, 256  }
  0x44   : > { %904 = vsyncadd (%p1054_p8), %s280_s19, 4294967040  ;;  %v945_v0 = vmov 0.0|0.0   ;;  %vm946_vm0 = vmmov 0   ;;  %v947_v1 = vmov 0.0   ;;  %v948_v2 = vmov 0   ;;  %v314_v3 = vld [vmem:[%s283_s21] sm:$0xff] }
  0x45   : > { %718 = vmatprep.subr.bf16.mxu0 %v945_v0  ;;  %705 = vmatprep.mubr.msk.f32.mxu0 %vm946_vm0, %v947_v1  ;;  %v315_v4 = vld [vmem:[%s283_s21 + $0x8] sm:$0xff]  ;;  %v317_v6 = vld [vmem:[%s1222_s2] sm:$0xff]  ;;  %vm323_vm1 = vcmask 130048   ;;  %vm406_vm2 = vcmask 64512   ;;  %s1145_s11 = scalar_lea.vmem [#allocation5], %s683_s18  ;;  %vm492_vm3 = vcmask 1043456  }
  0x46   : > { %809 = vset.pattern.permute.xlu0 %v948_v2  ;;  %708 = vmatprep.subr.mxu1 %v947_v1  ;;  %v719_v5 = vpack.c.bf16 %v315_v4, %v314_v3  ;;  %v316_v7 = vld [vmem:[%s1221_s1] sm:$0xff]  ;;  %s1243_s21 = sld [smem:[#allocation11_spill]]  ;;  %vm488_vm4 = vcmask 31744   ;;  %s690_s7 = sshll.u32 %s927_s28, 2 }
  0x47   : > { %710 = vmatprep.mubr.msk.f32.mxu1 %vm946_vm0, %v947_v1  ;;  %810 = vset.pattern.permute.xlu1 %v948_v2  ;;  %v400_v8 = vld [vmem:[%s1224_s4] sm:$0xf]  ;;  %s584_s14 = sadd.s32 %s923_s27, %s690_s7  ;;  %s587_s16 = sshll.u32 %s1145_s11, 4  ;;  %s1159_s16 = int_to_ptr.vmem [resolvable:$true] %s587_s16 }
  0x48   : > { %320 = vperm.xlu0 %809, %v317_v6   ;;  %720 = vmatpush3.bf16.msra.mxu0 %v719_v5  ;;  %v399_v14 = vld [vmem:[%s1223_s3] sm:$0xf]  ;;  %s691_s13 = sshll.u32 %s584_s14, 7  ;;  %s1244_s9 = sld [smem:[#allocation12_spill]] }
  0x49   : > { %v482_v15 = vld [vmem:[%s1226_s6] sm:$0xf]  ;;  %s573_s27 = scalar_lea.sflag [#allocation4], %s1119_s15  ;;  %s841_s28 = scalar_lea.vmem %s1159_s16, 256 }
  0x4a   : > { %485 = vperm.xlu1 %810, %v482_v15   ;;  %p842_p8 = scmp.ne.s32.totalorder %s1159_s16, %s841_s28  ;;  %p1245_p9 = scmp.ne.s32.totalorder %s1240_s17, 0 }
  0x4b   : > { %706 = vmatmul.mubr.msk.f32.vlgmr.msra.gmra.mrb[0].mxu0 %vm323_vm1, %v316_v7  ;;  %s949_s5 = smov [#allocation5]  }
  0x4c   : > { %403 = vperm.xlu0 %809, %v400_v8   ;;  %v481_v21 = vld [vmem:[%s1243_s21] sm:$0xf]  ;;  %p843_p12 = pnand %p842_p8, %p1245_p9  ;;  %s845_s12 = sshll.u32 %s949_s5, 4  ;;  %s846_s12 = int_to_ptr.vmem [resolvable:$false] %s845_s12 }
  0x4d   : > { %s847_s18 = scalar_lea.vmem %s846_s12, 512  ;;  %p848_p11 = scmp.lt.s32.totalorder %s1159_s16, %s846_s12 }
  0x4e   : > { %s1164_s10 = scalar_lea.hbm %s1244_s9, %s691_s13  ;;  %p844_p0 = pneg %p843_p12 }
  0x4f   : > { %p849_p13 = scmp.lt.s32.totalorder %s847_s18, %s841_s28 }
  0x51   : > { %p850_p1 = por %p849_p13, %p848_p11 }
  0x53   : > { %p851_p4 = pnand %p850_p1, %p844_p0 }
  0xc7   : > { %v321_v9 = vpop.permute.xlu0 %320 }
  0xc9   : > { %v486_v22 = vpop.permute.xlu1 %485 }
  0xcb   : > { %v404_v16 = vpop.permute.xlu0 %403 }
 0x11e   : > { %v393_v10 = vpop.f32.mrb[0].mxu0 }
 0x11f   : > { %v394_v11 = vadd.f32 %v393_v10, %v321_v9  ;;  %v707_v12 = vpop.f32.mrb[1].mxu0 }
 0x121   : > { %v397_v13 = vmax.f32 %v394_v11, 0.0 }
 0x123   : > { %398 = vst [vmem:[%s1145_s11] sm:$0xff] %v397_v13  ;;  %709 = vmatpush3.msra.mxu1 %v397_v13 }
 0x124   : > { %711 = vmatmul.mubr.msk.f32.vlgmr.msra.gmra.mrb[0].mxu1 %vm406_vm2, %v399_v14  ;;  %713 = vmatprep.subr.mxu1 %v947_v1 }
 0x125   : > { %715 = vmatprep.mubr.msk.f32.mxu1 %vm946_vm0, %v947_v1 }
 0x1f7   : > { %v476_v17 = vpop.f32.mrb[0].mxu1 }
 0x1f8   : > { %v477_v18 = vadd.f32 %v476_v17, %v404_v16  ;;  %v712_v19 = vpop.f32.mrb[1].mxu1 }
 0x1fa   : > { %v480_v20 = vmax.f32 %v477_v18, 0.0 }
 0x1fc   : > { %714 = vmatpush3.msk.msra.mxu1 %vm492_vm3, %v480_v20 }
 0x1fd   : > { %716 = vmatmul.mubr.msk.f32.vlgmr.msra.gmra.mrb[2].mxu1 %vm488_vm4, %v481_v21 }
 0x2d0   : > { %v562_v23 = vpop.f32.mrb[2].mxu1 }
 0x2d1   : > { %v563_v24 = vadd.f32 %v562_v23, %v486_v22  ;;  %v717_v25 = vpop.f32.mrb[3].mxu1 }
 0x2d3   : > { %v566_v26 = vmax.f32 %v563_v24, 0.0 }
 0x2d5   : > { %v568_v27 = vrot.slane %v566_v26, 4 }
 0x2d7   : > { %v570_v28 = vsel %vm492_vm3, %v480_v20, %v568_v27 }
 0x2d8   : > { %571 = vst [vmem:[%s1145_s11 + $0x8] sm:$0xff] %v570_v28 }
 0x2d9   : > { %854 = shalt.err (!%p851_p4)
}
 0x2da   : > { %s855_s11 = scalar_lea.hbm %s1164_s10, 256  ;;  %s859_s7 = scalar_lea.hbm %s1244_s9, 1024 }
 0x2db   : > { %p856_p3 = scmp.ne.s32.totalorder %s1164_s10, %s855_s11  ;;  %p860_p2 = scmp.lt.u32.totalorder %s1164_s10, %s1244_s9 }
 0x2dc   : > { %p861_p5 = scmp.lt.u32.totalorder %s859_s7, %s855_s11  ;;  %p863_p8 = scmp.lt.u32.totalorder %s855_s11, %s1164_s10 }
 0x2dd   : > { %p857_p6 = pnand %p856_p3, %p1245_p9 }
 0x2de   : > { %p862_p10 = por %p861_p5, %p860_p2 }
 0x2df   : > { %p858_p7 = pneg %p857_p6 }
 0x2e0   : > { %p864_p12 = por %p863_p8, %p862_p10 }
 0x2e2   : > { %p865_p0 = pnand %p864_p12, %p858_p7 }
 0x2e4   : > { %868 = shalt.err (!%p865_p0)
}
 0x2e5   : > { %s950_s24 = smov 128   ;;  %s951_s23 = smov 256  }
 0x2e6   : > { %s952_s28 = smov 8  }
 0x2e7   : > { %723 = dma.vmem_to_hbm [thread:$0]  (%p1245_p9), %s1159_s16, 256, %s1164_s10, %s573_s27, %s950_s24, %s951_s23, %s952_s28  }
 0x2e8 PF: > { %s1246_s5 = sld [smem:[#allocation8_spill]]  ;;  %p734_p11 = scmp.ge.s32.totalorder %s939_s8, 2 }
 0x2e9   : > { %p1247_p13 = scmp.ne.s32.totalorder %s1241_s20, 0 }
 0x2eb   : > { %p730_p1 = pnand %p734_p11, %p1247_p13 }
 0x2ee   : > { %s602_s12 = sand.u32 1, %s1246_s5  }
 0x2ef   : > { %s603_s18 = scalar_lea.sflag [#allocation4], %s602_s12 }
 0x2f0   : > { %906 = dma.done.wait (!%p730_p1), %s603_s18, 256  }
 0x2f1   : > { %908 = vsyncadd (!%p730_p1), %s603_s18, 4294967040  ;;  %s23_s8 = sadd.s32 1, %s939_s8   ;;  %s1248_s17 = sld [smem:[#allocation9_spill]] }
 0x2f2   : > { %p20_p4 = scmp.ge.s32.totalorder %s23_s8, 6   ;;  %s1249_s15 = sld [smem:[#allocation10_spill]] }
 0x2f3   : > { %s1250_s24 = smov %s915_s25  ;;  %s1251_s25 = smov %s919_s26 }
 0x2f4   : > { %s1252_s26 = smov %s1071_s22  ;;  %s1253_s27 = smov %s931_s29 }
 0x2f5   : > { %s1254_s28 = smov %s935_s30  ;;  %22 = sbr.rel (!%p20_p4) target bundleno = 10 (0xa), region = 93 }
 0x2f7   : > { %s1255_s29 = smov %s1248_s17 }
 0x2f8   : > { %s1256_s30 = smov %s1249_s15 }
 0x2fc   :  { %608 = vsyncpa [#allocation3], 1 }
 0x2fd   :  { %610 = vsyncpa [#allocation3 + $0x1], 1 }
 0x2fe   :  { %611 = vsyncpa [#allocation4], 1 }
 0x2ff   :  { %613 = vsyncpa [#allocation4 + $0x1], 1 }

</bundles_post_ra>
